<compile_context>
chip_gen: v7x
topology: tpu7x:2x2x1
jax: 0.10.0
libtpu: 0.0.40
codegen_flags: <defaults>
</compile_context>

<pallas_src>
import functools

import jax
import jax.numpy as jnp
from jax.experimental import pallas as pl
from jax.experimental.pallas import tpu as pltpu

_LANE = 128      # TPU lane width
_BATCH_TILE = 8  # sublane-aligned batch tile


# ----------------------------- Pallas kernel -----------------------------

def _decoder_kernel(x_ref, w_ref, b_ref, o_ref, *, inv_hw):
    """Fused global-avg-pool + Linear.

    x_ref: (TB, C, HW)   f32 activations (native NCHW layout, spatial on lanes)
    w_ref: (C, NCpad)    bf16 FC weight (transposed + lane-padded)
    b_ref: (1, NCpad)    f32 FC bias (lane-padded)
    o_ref: (TB, NCpad)   f32 logits (lane-dense store)
    """
    # Global average pool over the spatial axis, in f32 (XLU lane reduce; hidden
    # behind the activation DMA which dominates this kernel).
    avg = jnp.sum(x_ref[...], axis=2) * inv_hw                        # (TB, C) f32
    # MXU matmul: bf16 operands, f32 accumulation.
    y = jnp.dot(avg.astype(jnp.bfloat16), w_ref[...],
                preferred_element_type=jnp.float32)                   # (TB, NCpad) f32
    # Epilogue stays in f32 (v5e has no bf16 VPU path).
    o_ref[...] = y + b_ref[...]


# ----------------------------- wrapper -----------------------------

def prepare_decoder_params(fc_w, fc_b):
    """Fold PyTorch Linear params into kernel-ready form ONCE (not per forward).

    fc_w: (n_classes, in_features)  -> (in_features, NCpad) bf16
    fc_b: (n_classes,)              -> (1, NCpad) f32
    """
    n_classes, in_features = fc_w.shape
    ncpad = max(_LANE, pl.cdiv(n_classes, _LANE) * _LANE)
    w = jnp.zeros((in_features, ncpad), jnp.bfloat16)
    w = w.at[:, :n_classes].set(fc_w.T.astype(jnp.bfloat16))
    b = jnp.zeros((1, ncpad), jnp.float32)
    b = b.at[0, :n_classes].set(fc_b.astype(jnp.float32))
    return w, b


def resnet_decoder(x_nchw, w_pad, b_pad, n_classes, *, batch_tile=_BATCH_TILE):
    """Forward of ResnetDecoder: global avg pool over (H, W) then Linear.

    x_nchw: (N, C, H, W) float32 (PyTorch layout)
    returns: (N, n_classes) float32
    """
    n, c, h, w = x_nchw.shape
    hw = h * w
    ncpad = w_pad.shape[1]

    # Free contiguous collapse (no transpose, no extra HBM round trip).
    x = x_nchw.reshape(n, c, hw).astype(jnp.float32)

    # Pad batch to a multiple of the batch tile so the grid is uniform.
    tb = batch_tile
    npad = pl.cdiv(n, tb) * tb
    if npad != n:
        x = jnp.pad(x, ((0, npad - n), (0, 0), (0, 0)))
    grid = (npad // tb,)

    # VMEM budget (double-buffered inputs/outputs) + headroom; tiny for this kernel
    # and well under the 64 MiB physical VMEM of v7x even at larger H*W / batch.
    x_blk = tb * c * hw * 4
    w_blk = c * ncpad * 2
    b_blk = ncpad * 4
    o_blk = tb * ncpad * 4
    vmem_bytes = int(max(2 * (x_blk + w_blk + b_blk + o_blk) + (1 << 20), 4 << 20))

    cost = pl.CostEstimate(
        flops=2 * npad * hw * c + 2 * npad * c * ncpad,   # pool adds + matmul
        transcendentals=0,
        bytes_accessed=npad * c * hw * 4 + c * ncpad * 2 + ncpad * 4 + npad * ncpad * 4,
    )

    out = pl.pallas_call(
        functools.partial(_decoder_kernel, inv_hw=float(1.0 / hw)),
        out_shape=jax.ShapeDtypeStruct((npad, ncpad), jnp.float32),
        grid_spec=pltpu.PrefetchScalarGridSpec(
            num_scalar_prefetch=0,
            grid=grid,
            in_specs=[
                pl.BlockSpec((tb, c, hw), lambda i: (i, 0, 0)),   # activations tile
                pl.BlockSpec((c, ncpad), lambda i: (0, 0)),       # full weight (resident)
                pl.BlockSpec((1, ncpad), lambda i: (0, 0)),       # full bias (resident)
            ],
            out_specs=pl.BlockSpec((tb, ncpad), lambda i: (i, 0)),
        ),
        compiler_params=pltpu.CompilerParams(
            dimension_semantics=("parallel",),   # batch tiles independent -> 2 TCs on v7x
            vmem_limit_bytes=vmem_bytes,
        ),
        cost_estimate=cost,
    )(x, w_pad, b_pad)

    # Strip batch and lane padding.
    return out[:n, :n_classes]


# ----------------------------- reference & demo -----------------------------

def _reference(x_nchw, fc_w, fc_b):
    avg = jnp.mean(x_nchw, axis=(2, 3))            # (N, C)
    return avg @ fc_w.T + fc_b                     # (N, n_classes)


if __name__ == "__main__":
    key = jax.random.PRNGKey(0)
    kx, kw, kb = jax.random.split(key, 3)

    # Decoder input = final ResNet feature map: batch=2, in_features=64, 8x8 spatial.
    N, C, H, W = 2, 64, 8, 8
    n_classes = 10

    x = jax.random.normal(kx, (N, C, H, W), jnp.float32)
    fc_w = 0.1 * jax.random.normal(kw, (n_classes, C), jnp.float32)
    fc_b = 0.1 * jax.random.normal(kb, (n_classes,), jnp.float32)

    w_pad, b_pad = prepare_decoder_params(fc_w, fc_b)

    fwd = jax.jit(lambda xx: resnet_decoder(xx, w_pad, b_pad, n_classes))
    out = fwd(x)
    jax.block_until_ready(out)

    ref = _reference(x, fc_w, fc_b)
    assert out.shape == (N, n_classes) and out.dtype == jnp.float32
    # bf16 MXU operands -> small drift vs f32 reference.
    assert jnp.allclose(out, ref, atol=2e-2, rtol=2e-2), float(jnp.max(jnp.abs(out - ref)))
    print("KERNEL_OK")
</pallas_src>

<mosaic_0001>
module attributes {stable_mosaic.version = 11 : i64} {
  func.func @_decoder_kernel(%arg0: i32, %arg1: memref<8x64x64xf32, #tpu.memory_space<vmem>>, %arg2: memref<64x128xbf16, #tpu.memory_space<vmem>>, %arg3: memref<1x128xf32, #tpu.memory_space<vmem>>, %arg4: memref<8x128xf32, #tpu.memory_space<vmem>>) attributes {dimension_semantics = [#tpu.dimension_semantics<parallel>], iteration_bounds = array<i64: 1>, scalar_prefetch = 0 : i64, scratch_operands = 0 : i64, tpu.core_type = #tpu.core_type<tc>, window_params = [{transform_indices = @transform_0, window_bounds = array<i64: 8, 64, 64>}, {pipeline_mode = #tpu.pipeline_mode<synchronous>, transform_indices = @transform_1, window_bounds = array<i64: 64, 128>}, {pipeline_mode = #tpu.pipeline_mode<synchronous>, transform_indices = @transform_2, window_bounds = array<i64: 1, 128>}, {transform_indices = @transform_3, window_bounds = array<i64: 8, 128>}]} {
    %c0 = arith.constant 0 : index
    %c0_0 = arith.constant 0 : index
    %c0_1 = arith.constant 0 : index
    %0 = vector.load %arg1[%c0, %c0_0, %c0_1] : memref<8x64x64xf32, #tpu.memory_space<vmem>>, vector<8x64x64xf32>
    %cst = arith.constant dense<0.000000e+00> : vector<8x64xf32>
    %1 = vector.multi_reduction <add>, %0, %cst [2] : vector<8x64x64xf32> to vector<8x64xf32>
    %cst_2 = arith.constant 1.562500e-02 : f32
    %2 = vector.broadcast %cst_2 : f32 to vector<8x64xf32>
    %3 = arith.mulf %1, %2 : vector<8x64xf32>
    %4 = arith.truncf %3 : vector<8x64xf32> to vector<8x64xbf16>
    %c0_3 = arith.constant 0 : index
    %c0_4 = arith.constant 0 : index
    %5 = vector.load %arg2[%c0_3, %c0_4] : memref<64x128xbf16, #tpu.memory_space<vmem>>, vector<64x128xbf16>
    %cst_5 = arith.constant dense<0.000000e+00> : vector<8x128xf32>
    %6 = tpu.matmul %4, %5, %cst_5 {dimension_numbers = #tpu.dot_dimension_numbers<[1], [0], [0], [1], [0, 0, 1, 1], [], []>} : vector<8x64xbf16>, vector<64x128xbf16>, vector<8x128xf32> -> vector<8x128xf32>
    %c0_6 = arith.constant 0 : index
    %c0_7 = arith.constant 0 : index
    %7 = vector.load %arg3[%c0_6, %c0_7] : memref<1x128xf32, #tpu.memory_space<vmem>>, vector<1x128xf32>
    %8 = vector.broadcast %7 : vector<1x128xf32> to vector<8x128xf32>
    %9 = arith.addf %6, %8 : vector<8x128xf32>
    %c0_8 = arith.constant 0 : index
    %c0_9 = arith.constant 0 : index
    %10 = vector.load %arg4[%c0_8, %c0_9] : memref<8x128xf32, #tpu.memory_space<vmem>>, vector<8x128xf32>
    tpu.vector_store %arg4[%c0_8, %c0_9], %9 {strides = array<i32>} : memref<8x128xf32, #tpu.memory_space<vmem>>, vector<8x128xf32>,
    return
  }
  func.func @transform_0(%arg0: i32) -> (i32, i32, i32) {
    %c0_i32 = arith.constant 0 : i32
    %c0_i32_0 = arith.constant 0 : i32
    %c0_i32_1 = arith.constant 0 : i32
    return %arg0, %c0_i32, %c0_i32_0 : i32, i32, i32
  }
  func.func @transform_1(%arg0: i32) -> (i32, i32) {
    %c0_i32 = arith.constant 0 : i32
    %c0_i32_0 = arith.constant 0 : i32
    %c0_i32_1 = arith.constant 0 : i32
    return %c0_i32, %c0_i32_0 : i32, i32
  }
  func.func @transform_2(%arg0: i32) -> (i32, i32) {
    %c0_i32 = arith.constant 0 : i32
    %c0_i32_0 = arith.constant 0 : i32
    %c0_i32_1 = arith.constant 0 : i32
    return %c0_i32, %c0_i32_0 : i32, i32
  }
  func.func @transform_3(%arg0: i32) -> (i32, i32) {
    %c0_i32 = arith.constant 0 : i32
    %c0_i32_0 = arith.constant 0 : i32
    return %arg0, %c0_i32 : i32, i32
  }
}

</mosaic_0001>

<bundles_post_ra>
// kernel: _lambda_.1
= control target key start
LH: loop header
LB: loop body
LE: loop exit
PB: predicated region body
PF: predicated region fallthrough
CT: control target
= control target key end

     0   :  { %vm79_vm0 = vcmask 523264   ;;  %vm924_vm1 = vmmov 0   ;;  %vm490_vm2 = vcmask 130112   ;;  %vm497_vm3 = vcmask 195712   ;;  %s1398_s0 = inlined_call_operand.vmem [shape: f32[8,64,64], index: 0, kind: input, shape index: {}]   ;;  %s1399_s1 = inlined_call_operand.vmem [shape: bf16[64,128], index: 1, kind: input, shape index: {}]   ;;  %s1400_s2 = inlined_call_operand.vmem [shape: f32[1,128], index: 2, kind: input, shape index: {}]   ;;  %s1401_s3 = inlined_call_operand.vmem [shape: f32[8,128], index: 3, kind: output, shape index: {}]  }
   0x1   :  { %v23_v0 = vld [vmem:[%s1398_s0 + $0x40] sm:$0xff]  ;;  %v24_v2 = vld [vmem:[%s1398_s0 + $0x48] sm:$0xff]  ;;  %v18_v8 = vld [vmem:[%s1398_s0 + $0x18] sm:$0xff]  ;;  %vm504_vm4 = vcmask 261312   ;;  %vm511_vm5 = vcmask 326912   ;;  %vm518_vm6 = vcmask 392512  }
   0x2   :  { %v15_v1 = vld [vmem:[%s1398_s0] sm:$0xff]  ;;  %v104_v3 = vsel %vm79_vm0, %v23_v0, 0.0  ;;  %v16_v5 = vld [vmem:[%s1398_s0 + $0x8] sm:$0xff]  ;;  %v107_v6 = vsel %vm79_vm0, %v24_v2, 0.0  ;;  %v17_v9 = vld [vmem:[%s1398_s0 + $0x10] sm:$0xff]  ;;  %v89_v10 = vsel %vm79_vm0, %v18_v8, 0.0 }
   0x3   :  { %v80_v4 = vsel %vm79_vm0, %v15_v1, 0.0  ;;  %105 = vadd.xlane.f32.xlu1 %v104_v3  ;;  %v83_v7 = vsel %vm79_vm0, %v16_v5, 0.0  ;;  %v86_v11 = vsel %vm79_vm0, %v17_v9, 0.0  ;;  %v26_v12 = vld [vmem:[%s1398_s0 + $0x58] sm:$0xff]  ;;  %v25_v13 = vld [vmem:[%s1398_s0 + $0x50] sm:$0xff]  ;;  %v32_v16 = vld [vmem:[%s1398_s0 + $0x88] sm:$0xff] }
   0x4   :  { %81 = vadd.xlane.f32.xlu0 %v80_v4  ;;  %v113_v14 = vsel %vm79_vm0, %v26_v12, 0.0  ;;  %v110_v15 = vsel %vm79_vm0, %v25_v13, 0.0  ;;  %v31_v17 = vld [vmem:[%s1398_s0 + $0x80] sm:$0xff]  ;;  %v131_v18 = vsel %vm79_vm0, %v32_v16, 0.0  ;;  %v34_v20 = vld [vmem:[%s1398_s0 + $0x98] sm:$0xff]  ;;  %v33_v21 = vld [vmem:[%s1398_s0 + $0x90] sm:$0xff] }
   0x5   :  { %v128_v19 = vsel %vm79_vm0, %v31_v17, 0.0  ;;  %v137_v22 = vsel %vm79_vm0, %v34_v20, 0.0  ;;  %v134_v23 = vsel %vm79_vm0, %v33_v21, 0.0  ;;  %v40_v24 = vld [vmem:[%s1398_s0 + $0xc8] sm:$0xff]  ;;  %v39_v25 = vld [vmem:[%s1398_s0 + $0xc0] sm:$0xff]  ;;  %v42_v36 = vld [vmem:[%s1398_s0 + $0xd8] sm:$0xff] }
   0x6   :  { %v155_v26 = vsel %vm79_vm0, %v40_v24, 0.0  ;;  %v152_v27 = vsel %vm79_vm0, %v39_v25, 0.0  ;;  %v20_v28 = vld [vmem:[%s1398_s0 + $0x28] sm:$0xff]  ;;  %v19_v29 = vld [vmem:[%s1398_s0 + $0x20] sm:$0xff]  ;;  %v41_v37 = vld [vmem:[%s1398_s0 + $0xd0] sm:$0xff]  ;;  %v161_v38 = vsel %vm79_vm0, %v42_v36, 0.0 }
   0x7   :  { %108 = vadd.xlane.f32.xlu1 %v107_v6  ;;  %v95_v30 = vsel %vm79_vm0, %v20_v28, 0.0  ;;  %v92_v31 = vsel %vm79_vm0, %v19_v29, 0.0  ;;  %v28_v32 = vld [vmem:[%s1398_s0 + $0x68] sm:$0xff]  ;;  %v27_v33 = vld [vmem:[%s1398_s0 + $0x60] sm:$0xff]  ;;  %v158_v39 = vsel %vm79_vm0, %v41_v37, 0.0  ;;  %v50_v48 = vld [vmem:[%s1398_s0 + $0x118] sm:$0xff] }
   0x8   :  { %84 = vadd.xlane.f32.xlu0 %v83_v7  ;;  %v119_v34 = vsel %vm79_vm0, %v28_v32, 0.0  ;;  %v116_v35 = vsel %vm79_vm0, %v27_v33, 0.0  ;;  %v48_v40 = vld [vmem:[%s1398_s0 + $0x108] sm:$0xff]  ;;  %v47_v41 = vld [vmem:[%s1398_s0 + $0x100] sm:$0xff]  ;;  %v49_v49 = vld [vmem:[%s1398_s0 + $0x110] sm:$0xff]  ;;  %v185_v50 = vsel %vm79_vm0, %v50_v48, 0.0 }
   0x9   :  { %v179_v42 = vsel %vm79_vm0, %v48_v40, 0.0  ;;  %v176_v43 = vsel %vm79_vm0, %v47_v41, 0.0  ;;  %v36_v44 = vld [vmem:[%s1398_s0 + $0xa8] sm:$0xff]  ;;  %v35_v45 = vld [vmem:[%s1398_s0 + $0xa0] sm:$0xff]  ;;  %v182_v51 = vsel %vm79_vm0, %v49_v49, 0.0  ;;  %v22_v56 = vld [vmem:[%s1398_s0 + $0x38] sm:$0xff] }
   0xa   :  { %v143_v46 = vsel %vm79_vm0, %v36_v44, 0.0  ;;  %v140_v47 = vsel %vm79_vm0, %v35_v45, 0.0  ;;  %v56_v52 = vld [vmem:[%s1398_s0 + $0x148] sm:$0xff]  ;;  %v55_v53 = vld [vmem:[%s1398_s0 + $0x140] sm:$0xff]  ;;  %v21_v57 = vld [vmem:[%s1398_s0 + $0x30] sm:$0xff]  ;;  %v101_v58 = vsel %vm79_vm0, %v22_v56, 0.0 }
   0xb   :  { %90 = vadd.xlane.f32.xlu1 %v89_v10  ;;  %v203_v54 = vsel %vm79_vm0, %v56_v52, 0.0  ;;  %v200_v55 = vsel %vm79_vm0, %v55_v53, 0.0  ;;  %v98_v59 = vsel %vm79_vm0, %v21_v57, 0.0  ;;  %v30_v60 = vld [vmem:[%s1398_s0 + $0x78] sm:$0xff]  ;;  %v29_v61 = vld [vmem:[%s1398_s0 + $0x70] sm:$0xff]  ;;  %v44_v0 = vld [vmem:[%s1398_s0 + $0xe8] sm:$0xff] }
   0xc   :  { %87 = vadd.xlane.f32.xlu0 %v86_v11  ;;  %v125_v62 = vsel %vm79_vm0, %v30_v60, 0.0  ;;  %v122_v63 = vsel %vm79_vm0, %v29_v61, 0.0  ;;  %v43_v1 = vld [vmem:[%s1398_s0 + $0xe0] sm:$0xff]  ;;  %v167_v2 = vsel %vm79_vm0, %v44_v0, 0.0  ;;  %v58_v4 = vld [vmem:[%s1398_s0 + $0x158] sm:$0xff]  ;;  %v57_v5 = vld [vmem:[%s1398_s0 + $0x150] sm:$0xff] }
   0xd   :  { %v164_v3 = vsel %vm79_vm0, %v43_v1, 0.0  ;;  %v209_v6 = vsel %vm79_vm0, %v58_v4, 0.0  ;;  %v206_v7 = vsel %vm79_vm0, %v57_v5, 0.0  ;;  %v64_v8 = vld [vmem:[%s1398_s0 + $0x188] sm:$0xff]  ;;  %v63_v9 = vld [vmem:[%s1398_s0 + $0x180] sm:$0xff]  ;;  %v38_v12 = vld [vmem:[%s1398_s0 + $0xb8] sm:$0xff] }
   0xe   :  { %v227_v10 = vsel %vm79_vm0, %v64_v8, 0.0  ;;  %v224_v11 = vsel %vm79_vm0, %v63_v9, 0.0  ;;  %v37_v13 = vld [vmem:[%s1398_s0 + $0xb0] sm:$0xff]  ;;  %v52_v16 = vld [vmem:[%s1398_s0 + $0x128] sm:$0xff]  ;;  %v51_v17 = vld [vmem:[%s1398_s0 + $0x120] sm:$0xff]  ;;  %v923_v1 = vmov 0.0  }
   0xf   :  { %114 = vadd.xlane.f32.xlu1 %v113_v14  ;;  %v149_v14 = vsel %vm79_vm0, %v38_v12, 0.0  ;;  %v66_v20 = vld [vmem:[%s1398_s0 + $0x198] sm:$0xff]  ;;  %v65_v21 = vld [vmem:[%s1398_s0 + $0x190] sm:$0xff]  ;;  %v72_v24 = vld [vmem:[%s1398_s0 + $0x1c8] sm:$0xff]  ;;  %905 = vmatprep.subr.bf16.mxu0 %v923_v1  ;;  %vm525_vm7 = vcmask 458112   ;;  %vm532_vm8 = vcmask 523712  }
  0x10   :  { %111 = vadd.xlane.f32.xlu0 %v110_v15  ;;  %v146_v15 = vsel %vm79_vm0, %v37_v13, 0.0  ;;  %v71_v25 = vld [vmem:[%s1398_s0 + $0x1c0] sm:$0xff]  ;;  %v46_v28 = vld [vmem:[%s1398_s0 + $0xf8] sm:$0xff]  ;;  %v45_v29 = vld [vmem:[%s1398_s0 + $0xf0] sm:$0xff]  ;;  %913 = vmatprep.mubr.msk.bf16.mxu0 %vm924_vm1, %v923_v1  ;;  %vm807_vm9 = vcmask 1041409   ;;  %vm809_vm10 = vcmask 1042434  }
  0x11   :  { %v60_v32 = vld [vmem:[%s1398_s0 + $0x168] sm:$0xff]  ;;  %v59_v33 = vld [vmem:[%s1398_s0 + $0x160] sm:$0xff]  ;;  %v74_v36 = vld [vmem:[%s1398_s0 + $0x1d8] sm:$0xff]  ;;  %vm811_vm11 = vcmask 1043459   ;;  %vm813_vm12 = vcmask 1044484   ;;  %vm815_vm13 = vcmask 1045509  }
  0x12   :  { %v73_v37 = vld [vmem:[%s1398_s0 + $0x1d0] sm:$0xff]  ;;  %v54_v40 = vld [vmem:[%s1398_s0 + $0x138] sm:$0xff]  ;;  %v68_v44 = vld [vmem:[%s1398_s0 + $0x1a8] sm:$0xff]  ;;  %vm817_vm14 = vcmask 1046534   ;;  %vm819_vm15 = vcmask 1047559  }
  0x13   :  { %132 = vadd.xlane.f32.xlu1 %v131_v18  ;;  %v191_v18 = vsel %vm79_vm0, %v52_v16, 0.0  ;;  %v53_v41 = vld [vmem:[%s1398_s0 + $0x130] sm:$0xff]  ;;  %v67_v45 = vld [vmem:[%s1398_s0 + $0x1a0] sm:$0xff]  ;;  %v62_v48 = vld [vmem:[%s1398_s0 + $0x178] sm:$0xff] }
  0x14   :  { %129 = vadd.xlane.f32.xlu0 %v128_v19  ;;  %v188_v19 = vsel %vm79_vm0, %v51_v17, 0.0  ;;  %v61_v49 = vld [vmem:[%s1398_s0 + $0x170] sm:$0xff]  ;;  %v76_v52 = vld [vmem:[%s1398_s0 + $0x1e8] sm:$0xff]  ;;  %v75_v53 = vld [vmem:[%s1398_s0 + $0x1e0] sm:$0xff] }
  0x15   :  { %v70_v56 = vld [vmem:[%s1398_s0 + $0x1b8] sm:$0xff]  ;;  %v69_v57 = vld [vmem:[%s1398_s0 + $0x1b0] sm:$0xff]  ;;  %v919_v0 = vld [vmem:[%s1399_s1] sm:$0xff]  }
  0x16   :  { %v78_v60 = vld [vmem:[%s1398_s0 + $0x1f8] sm:$0xff]  ;;  %v77_v61 = vld [vmem:[%s1398_s0 + $0x1f0] sm:$0xff]  ;;  %906 = vmatpush3.bf16.msra.mxu0 %v919_v0 }
  0x17   :  { %138 = vadd.xlane.f32.xlu1 %v137_v22  ;;  %v233_v22 = vsel %vm79_vm0, %v66_v20, 0.0  ;;  %907 = vmatprep.subr.bf16.mxu0 %v923_v1  ;;  %v922_v16 = vld [vmem:[%s1399_s1 + $0x18] sm:$0xff]  }
  0x18   :  { %135 = vadd.xlane.f32.xlu0 %v134_v23  ;;  %v230_v23 = vsel %vm79_vm0, %v65_v21, 0.0 }
  0x1b   :  { %156 = vadd.xlane.f32.xlu1 %v155_v26  ;;  %v251_v26 = vsel %vm79_vm0, %v72_v24, 0.0 }
  0x1c   :  { %153 = vadd.xlane.f32.xlu0 %v152_v27  ;;  %v248_v27 = vsel %vm79_vm0, %v71_v25, 0.0 }
  0x1f   :  { %96 = vadd.xlane.f32.xlu1 %v95_v30  ;;  %v173_v30 = vsel %vm79_vm0, %v46_v28, 0.0 }
  0x20   :  { %93 = vadd.xlane.f32.xlu0 %v92_v31  ;;  %v170_v31 = vsel %vm79_vm0, %v45_v29, 0.0 }
  0x23   :  { %120 = vadd.xlane.f32.xlu1 %v119_v34  ;;  %v215_v34 = vsel %vm79_vm0, %v60_v32, 0.0 }
  0x24   :  { %117 = vadd.xlane.f32.xlu0 %v116_v35  ;;  %v212_v35 = vsel %vm79_vm0, %v59_v33, 0.0 }
  0x27   :  { %162 = vadd.xlane.f32.xlu1 %v161_v38  ;;  %v257_v38 = vsel %vm79_vm0, %v74_v36, 0.0 }
  0x28   :  { %159 = vadd.xlane.f32.xlu0 %v158_v39  ;;  %v254_v39 = vsel %vm79_vm0, %v73_v37, 0.0 }
  0x2b   :  { %180 = vadd.xlane.f32.xlu1 %v179_v42  ;;  %v197_v42 = vsel %vm79_vm0, %v54_v40, 0.0 }
  0x2c   :  { %177 = vadd.xlane.f32.xlu0 %v176_v43  ;;  %v194_v43 = vsel %vm79_vm0, %v53_v41, 0.0 }
  0x2f   :  { %144 = vadd.xlane.f32.xlu1 %v143_v46  ;;  %v239_v46 = vsel %vm79_vm0, %v68_v44, 0.0 }
  0x30   :  { %141 = vadd.xlane.f32.xlu0 %v140_v47  ;;  %v236_v47 = vsel %vm79_vm0, %v67_v45, 0.0 }
  0x33   :  { %186 = vadd.xlane.f32.xlu1 %v185_v50  ;;  %v221_v50 = vsel %vm79_vm0, %v62_v48, 0.0 }
  0x34   :  { %183 = vadd.xlane.f32.xlu0 %v182_v51  ;;  %v218_v51 = vsel %vm79_vm0, %v61_v49, 0.0 }
  0x37   :  { %204 = vadd.xlane.f32.xlu1 %v203_v54  ;;  %v263_v54 = vsel %vm79_vm0, %v76_v52, 0.0 }
  0x38   :  { %201 = vadd.xlane.f32.xlu0 %v200_v55  ;;  %v260_v55 = vsel %vm79_vm0, %v75_v53, 0.0 }
  0x3b   :  { %102 = vadd.xlane.f32.xlu1 %v101_v58  ;;  %v245_v58 = vsel %vm79_vm0, %v70_v56, 0.0 }
  0x3c   :  { %99 = vadd.xlane.f32.xlu0 %v98_v59  ;;  %v242_v59 = vsel %vm79_vm0, %v69_v57, 0.0 }
  0x3f   :  { %126 = vadd.xlane.f32.xlu1 %v125_v62  ;;  %v269_v62 = vsel %vm79_vm0, %v78_v60, 0.0 }
  0x40   :  { %123 = vadd.xlane.f32.xlu0 %v122_v63  ;;  %v266_v63 = vsel %vm79_vm0, %v77_v61, 0.0 }
  0x43   :  { %168 = vadd.xlane.f32.xlu1 %v167_v2  ;;  %v479_v2 = vlaneseq }
  0x44   :  { %165 = vadd.xlane.f32.xlu0 %v164_v3  ;;  %v920_v3 = vld [vmem:[%s1399_s1 + $0x8] sm:$0xff]  }
  0x45   :  { %908 = vmatpush3.bf16.msra.mxu0 %v920_v3  ;;  %v1212_v9 = vshrl.u32 %v479_v2, 7 }
  0x46   :  { %909 = vmatprep.subr.bf16.mxu0 %v923_v1 }
  0x47   :  { %210 = vadd.xlane.f32.xlu1 %v209_v6  ;;  %v1207_v6 = vand.u32 127, %v479_v2 }
  0x48   :  { %207 = vadd.xlane.f32.xlu0 %v206_v7  ;;  %v921_v7 = vld [vmem:[%s1399_s1 + $0x10] sm:$0xff]  }
  0x49   :  { %910 = vmatpush3.bf16.msra.mxu0 %v921_v7  ;;  %v499_v20 = vadd.s32 4294967272, %v1207_v6  ;;  %v1222_v21 = vsub.s32 %v1207_v6, %v1212_v9 }
  0x4a   :  { %911 = vmatprep.subr.bf16.mxu0 %v923_v1 }
  0x4b   :  { %228 = vadd.xlane.f32.xlu1 %v227_v10  ;;  %v485_v10 = vadd.s32 4294967288, %v1207_v6 }
  0x4c   :  { %225 = vadd.xlane.f32.xlu0 %v224_v11 }
  0x4d   :  { %912 = vmatpush3.bf16.msra.mxu0 %v922_v16  ;;  %v506_v16 = vadd.s32 4294967264, %v1207_v6 }
  0x4f   :  { %150 = vadd.xlane.f32.xlu1 %v149_v14 }
  0x50   :  { %147 = vadd.xlane.f32.xlu0 %v146_v15 }
  0x53   :  { %192 = vadd.xlane.f32.xlu1 %v191_v18 }
  0x54   :  { %189 = vadd.xlane.f32.xlu0 %v188_v19  ;;  %v492_v19 = vadd.s32 4294967280, %v1207_v6 }
  0x57   :  { %234 = vadd.xlane.f32.xlu1 %v233_v22  ;;  %v1225_v22 = vsub.s32 %v485_v10, %v1212_v9 }
  0x58   :  { %231 = vadd.xlane.f32.xlu0 %v230_v23 }
  0x5b   :  { %252 = vadd.xlane.f32.xlu1 %v251_v26 }
  0x5c   :  { %249 = vadd.xlane.f32.xlu0 %v248_v27 }
  0x5f   :  { %174 = vadd.xlane.f32.xlu1 %v173_v30  ;;  %v1228_v30 = vsub.s32 %v492_v19, %v1212_v9 }
  0x60   :  { %171 = vadd.xlane.f32.xlu0 %v170_v31  ;;  %v1231_v31 = vsub.s32 %v499_v20, %v1212_v9 }
  0x63   :  { %216 = vadd.xlane.f32.xlu1 %v215_v34 }
  0x64   :  { %213 = vadd.xlane.f32.xlu0 %v212_v35 }
  0x67   :  { %258 = vadd.xlane.f32.xlu1 %v257_v38 }
  0x68   :  { %255 = vadd.xlane.f32.xlu0 %v254_v39 }
  0x6b   :  { %198 = vadd.xlane.f32.xlu1 %v197_v42 }
  0x6c   :  { %195 = vadd.xlane.f32.xlu0 %v194_v43 }
  0x6f   :  { %240 = vadd.xlane.f32.xlu1 %v239_v46 }
  0x70   :  { %237 = vadd.xlane.f32.xlu0 %v236_v47 }
  0x73   :  { %222 = vadd.xlane.f32.xlu1 %v221_v50 }
  0x74   :  { %219 = vadd.xlane.f32.xlu0 %v218_v51 }
  0x77   :  { %264 = vadd.xlane.f32.xlu1 %v263_v54 }
  0x78   :  { %261 = vadd.xlane.f32.xlu0 %v260_v55 }
  0x7b   :  { %246 = vadd.xlane.f32.xlu1 %v245_v58 }
  0x7c   :  { %243 = vadd.xlane.f32.xlu0 %v242_v59 }
  0x7f   :  { %270 = vadd.xlane.f32.xlu1 %v269_v62 }
  0x80   :  { %267 = vadd.xlane.f32.xlu0 %v266_v63 }
  0x90   :  { %v106_v4 = vpop.xlane.xlu1 %105 }
  0x91   :  { %v82_v5 = vpop.xlane.xlu0 %81  ;;  %v280_v8 = vmul.f32 0.015625, %v106_v4 }
  0x92   :  { %v272_v13 = vmul.f32 0.015625, %v82_v5 }
  0x94   :  { %v109_v11 = vpop.xlane.xlu1 %108 }
  0x95   :  { %v85_v12 = vpop.xlane.xlu0 %84  ;;  %v281_v14 = vmul.f32 0.015625, %v109_v11 }
  0x96   :  { %v273_v15 = vmul.f32 0.015625, %v85_v12 }
  0x97   :  { %v340_v17 = vpack.c.bf16 %v281_v14, %v280_v8 }
  0x98   :  { %v336_v18 = vpack.c.bf16 %v273_v15, %v272_v13  ;;  %v91_v23 = vpop.xlane.xlu1 %90 }
  0x99   :  { %v88_v24 = vpop.xlane.xlu0 %87  ;;  %v275_v27 = vmul.f32 0.015625, %v91_v23  ;;  %v423_v29 = vunpack.c.l.b16 %v340_v17  ;;  %v424_v32 = vunpack.c.h.b16 %v340_v17  ;;  %v513_v17 = vadd.s32 4294967256, %v1207_v6 }
  0x9a   :  { %v415_v25 = vunpack.c.l.b16 %v336_v18  ;;  %v416_v26 = vunpack.c.h.b16 %v336_v18  ;;  %v274_v28 = vmul.f32 0.015625, %v88_v24 }
  0x9b   :  { %v537_v42 = vrot.slane %v423_v29, %v1222_v21  ;;  %v541_v44 = vrot.slane %v424_v32, %v1225_v22  ;;  %v1259_v29 = vsub.s32 %v506_v16, %v1212_v9  ;;  %v1262_v32 = vsub.s32 %v513_v17, %v1212_v9 }
  0x9c   :  { %v484_v33 = vrot.slane %v415_v25, %v1222_v21  ;;  %v489_v34 = vrot.slane %v416_v26, %v1225_v22  ;;  %v337_v35 = vpack.c.bf16 %v275_v27, %v274_v28  ;;  %v115_v36 = vpop.xlane.xlu1 %114 }
  0x9d   :  { %v112_v37 = vpop.xlane.xlu0 %111  ;;  %v283_v38 = vmul.f32 0.015625, %v115_v36  ;;  %v542_v59 = vsel %vm490_vm2, %v541_v44, %v537_v42 }
  0x9e   :  { %v282_v39 = vmul.f32 0.015625, %v112_v37  ;;  %v417_v40 = vunpack.c.l.b16 %v337_v35  ;;  %v418_v41 = vunpack.c.h.b16 %v337_v35  ;;  %v491_v45 = vsel %vm490_vm2, %v489_v34, %v484_v33 }
  0xa0   :  { %v341_v43 = vpack.c.bf16 %v283_v38, %v282_v39  ;;  %v496_v46 = vrot.slane %v417_v40, %v1228_v30  ;;  %v503_v47 = vrot.slane %v418_v41, %v1231_v31  ;;  %v133_v48 = vpop.xlane.xlu1 %132 }
  0xa1   :  { %v130_v49 = vpop.xlane.xlu0 %129  ;;  %v289_v52 = vmul.f32 0.015625, %v133_v48 }
  0xa2   :  { %v425_v50 = vunpack.c.l.b16 %v341_v43  ;;  %v426_v51 = vunpack.c.h.b16 %v341_v43  ;;  %v288_v53 = vmul.f32 0.015625, %v130_v49  ;;  %v498_v54 = vsel %vm497_vm3, %v496_v46, %v491_v45 }
  0xa3   :  { %v505_v55 = vsel %vm504_vm4, %v503_v47, %v498_v54 }
  0xa4   :  { %v546_v56 = vrot.slane %v425_v50, %v1228_v30  ;;  %v551_v57 = vrot.slane %v426_v51, %v1231_v31  ;;  %v344_v58 = vpack.c.bf16 %v289_v52, %v288_v53  ;;  %v139_v60 = vpop.xlane.xlu1 %138 }
  0xa5   :  { %v136_v61 = vpop.xlane.xlu0 %135  ;;  %v291_v1 = vmul.f32 0.015625, %v139_v60 }
  0xa6   :  { %v547_v62 = vsel %vm497_vm3, %v546_v56, %v542_v59  ;;  %v431_v63 = vunpack.c.l.b16 %v344_v58  ;;  %v432_v0 = vunpack.c.h.b16 %v344_v58  ;;  %v290_v3 = vmul.f32 0.015625, %v136_v61 }
  0xa7   :  { %v552_v2 = vsel %vm504_vm4, %v551_v57, %v547_v62 }
  0xa8   :  { %v345_v4 = vpack.c.bf16 %v291_v1, %v290_v3  ;;  %v157_v5 = vpop.xlane.xlu1 %156  ;;  %v576_v8 = vrot.slane %v431_v63, %v1222_v21  ;;  %v580_v10 = vrot.slane %v432_v0, %v1225_v22 }
  0xa9   :  { %v154_v7 = vpop.xlane.xlu0 %153  ;;  %v297_v11 = vmul.f32 0.015625, %v157_v5 }
  0xaa   :  { %v296_v12 = vmul.f32 0.015625, %v154_v7  ;;  %v433_v13 = vunpack.c.l.b16 %v345_v4  ;;  %v434_v14 = vunpack.c.h.b16 %v345_v4  ;;  %v581_v24 = vsel %vm490_vm2, %v580_v10, %v576_v8 }
  0xac   :  { %v348_v15 = vpack.c.bf16 %v297_v11, %v296_v12  ;;  %v585_v18 = vrot.slane %v433_v13, %v1228_v30  ;;  %v590_v19 = vrot.slane %v434_v14, %v1231_v31  ;;  %v97_v20 = vpop.xlane.xlu1 %96 }
  0xad   :  { %v94_v23 = vpop.xlane.xlu0 %93  ;;  %v277_v25 = vmul.f32 0.015625, %v97_v20 }
  0xae   :  { %v276_v26 = vmul.f32 0.015625, %v94_v23  ;;  %v586_v27 = vsel %vm497_vm3, %v585_v18, %v581_v24  ;;  %v439_v42 = vunpack.c.l.b16 %v348_v15  ;;  %v440_v43 = vunpack.c.h.b16 %v348_v15 }
  0xaf   :  { %v1256_v28 = vsel %vm504_vm4, %v590_v19, %v586_v27 }
  0xb0   :  { %v338_v33 = vpack.c.bf16 %v277_v25, %v276_v26  ;;  %v121_v34 = vpop.xlane.xlu1 %120  ;;  %v615_v54 = vrot.slane %v439_v42, %v1222_v21  ;;  %v619_v56 = vrot.slane %v440_v43, %v1225_v22 }
  0xb1   :  { %v118_v35 = vpop.xlane.xlu0 %117  ;;  %v285_v38 = vmul.f32 0.015625, %v121_v34 }
  0xb2   :  { %v419_v36 = vunpack.c.l.b16 %v338_v33  ;;  %v420_v37 = vunpack.c.h.b16 %v338_v33  ;;  %v284_v39 = vmul.f32 0.015625, %v118_v35  ;;  %v620_v7 = vsel %vm490_vm2, %v619_v56, %v615_v54 }
  0xb4   :  { %v510_v40 = vrot.slane %v419_v36, %v1259_v29  ;;  %v517_v41 = vrot.slane %v420_v37, %v1262_v32  ;;  %v342_v44 = vpack.c.bf16 %v285_v38, %v284_v39  ;;  %v163_v45 = vpop.xlane.xlu1 %162 }
  0xb5   :  { %v160_v46 = vpop.xlane.xlu0 %159  ;;  %v299_v48 = vmul.f32 0.015625, %v163_v45 }
  0xb6   :  { %v512_v47 = vsel %vm511_vm5, %v510_v40, %v505_v55  ;;  %v298_v49 = vmul.f32 0.015625, %v160_v46  ;;  %v427_v51 = vunpack.c.l.b16 %v342_v44  ;;  %v428_v52 = vunpack.c.h.b16 %v342_v44 }
  0xb7   :  { %v1268_v50 = vsel %vm518_vm6, %v517_v41, %v512_v47 }
  0xb8   :  { %v349_v53 = vpack.c.bf16 %v299_v48, %v298_v49  ;;  %v556_v57 = vrot.slane %v427_v51, %v1259_v29  ;;  %v561_v58 = vrot.slane %v428_v52, %v1262_v32  ;;  %v181_v59 = vpop.xlane.xlu1 %180  ;;  %v520_v48 = vadd.s32 4294967248, %v1207_v6 }
  0xb9   :  { %v178_v60 = vpop.xlane.xlu0 %177  ;;  %v305_v62 = vmul.f32 0.015625, %v181_v59 }
  0xba   :  { %v441_v61 = vunpack.c.l.b16 %v349_v53  ;;  %v442_v55 = vunpack.c.h.b16 %v349_v53  ;;  %v304_v63 = vmul.f32 0.015625, %v178_v60  ;;  %v557_v0 = vsel %vm511_vm5, %v556_v57, %v552_v2 }
  0xbb   :  { %v1276_v1 = vsel %vm518_vm6, %v561_v58, %v557_v0  ;;  %v1304_v56 = vsub.s32 %v520_v48, %v1212_v9 }
  0xbc   :  { %v624_v3 = vrot.slane %v441_v61, %v1228_v30  ;;  %v629_v4 = vrot.slane %v442_v55, %v1231_v31  ;;  %v352_v5 = vpack.c.bf16 %v305_v62, %v304_v63  ;;  %v145_v8 = vpop.xlane.xlu1 %144 }
  0xbd   :  { %v142_v10 = vpop.xlane.xlu0 %141  ;;  %v293_v12 = vmul.f32 0.015625, %v145_v8 }
  0xbe   :  { %v625_v11 = vsel %vm497_vm3, %v624_v3, %v620_v7  ;;  %v292_v14 = vmul.f32 0.015625, %v142_v10  ;;  %v447_v2 = vunpack.c.l.b16 %v352_v5  ;;  %v448_v15 = vunpack.c.h.b16 %v352_v5 }
  0xbf   :  { %v1283_v13 = vsel %vm504_vm4, %v629_v4, %v625_v11 }
  0xc0   :  { %v346_v16 = vpack.c.bf16 %v293_v12, %v292_v14  ;;  %v187_v17 = vpop.xlane.xlu1 %186  ;;  %v654_v26 = vrot.slane %v447_v2, %v1222_v21  ;;  %v658_v27 = vrot.slane %v448_v15, %v1225_v22 }
  0xc1   :  { %v184_v18 = vpop.xlane.xlu0 %183  ;;  %v307_v19 = vmul.f32 0.015625, %v187_v17 }
  0xc2   :  { %v306_v20 = vmul.f32 0.015625, %v184_v18  ;;  %v435_v23 = vunpack.c.l.b16 %v346_v16  ;;  %v436_v24 = vunpack.c.h.b16 %v346_v16  ;;  %v659_v46 = vsel %vm490_vm2, %v658_v27, %v654_v26 }
  0xc4   :  { %v353_v25 = vpack.c.bf16 %v307_v19, %v306_v20  ;;  %v595_v33 = vrot.slane %v435_v23, %v1259_v29  ;;  %v600_v34 = vrot.slane %v436_v24, %v1262_v32  ;;  %v205_v35 = vpop.xlane.xlu1 %204 }
  0xc5   :  { %v202_v36 = vpop.xlane.xlu0 %201  ;;  %v313_v39 = vmul.f32 0.015625, %v205_v35 }
  0xc6   :  { %v449_v37 = vunpack.c.l.b16 %v353_v25  ;;  %v450_v38 = vunpack.c.h.b16 %v353_v25  ;;  %v312_v40 = vmul.f32 0.015625, %v202_v36  ;;  %v596_v41 = vsel %vm511_vm5, %v595_v33, %v1256_v28 }
  0xc7   :  { %v601_v42 = vsel %vm518_vm6, %v600_v34, %v596_v41  ;;  %v527_v28 = vadd.s32 4294967240, %v1207_v6 }
  0xc8   :  { %v663_v43 = vrot.slane %v449_v37, %v1228_v30  ;;  %v668_v44 = vrot.slane %v450_v38, %v1231_v31  ;;  %v1294_v45 = vpack.c.bf16 %v313_v39, %v312_v40  ;;  %v103_v47 = vpop.xlane.xlu1 %102 }
  0xc9   :  { %v100_v49 = vpop.xlane.xlu0 %99  ;;  %v279_v52 = vmul.f32 0.015625, %v103_v47  ;;  %v1307_v55 = vsub.s32 %v527_v28, %v1212_v9 }
  0xca   :  { %v664_v51 = vsel %vm497_vm3, %v663_v43, %v659_v46  ;;  %v278_v54 = vmul.f32 0.015625, %v100_v49 }
  0xcb   :  { %v1300_v53 = vsel %vm504_vm4, %v668_v44, %v664_v51 }
  0xcc   :  { %v339_v57 = vpack.c.bf16 %v279_v52, %v278_v54  ;;  %v127_v58 = vpop.xlane.xlu1 %126 }
  0xcd   :  { %v124_v59 = vpop.xlane.xlu0 %123  ;;  %v287_v60 = vmul.f32 0.015625, %v127_v58 }
  0xce   :  { %v286_v61 = vmul.f32 0.015625, %v124_v59  ;;  %v421_v62 = vunpack.c.l.b16 %v339_v57  ;;  %v422_v63 = vunpack.c.h.b16 %v339_v57 }
  0xd0   :  { %v343_v0 = vpack.c.bf16 %v287_v60, %v286_v61  ;;  %v524_v3 = vrot.slane %v421_v62, %v1304_v56  ;;  %v169_v4 = vpop.xlane.xlu1 %168  ;;  %v531_v8 = vrot.slane %v422_v63, %v1307_v55  ;;  %v455_v60 = vunpack.c.l.b16 %v1294_v45 }
  0xd1   :  { %v166_v6 = vpop.xlane.xlu0 %165  ;;  %v301_v26 = vmul.f32 0.015625, %v169_v4  ;;  %v456_v63 = vunpack.c.h.b16 %v1294_v45 }
  0xd2   :  { %v429_v5 = vunpack.c.l.b16 %v343_v0  ;;  %v430_v7 = vunpack.c.h.b16 %v343_v0  ;;  %v526_v10 = vsel %vm525_vm7, %v524_v3, %v1268_v50  ;;  %v300_v27 = vmul.f32 0.015625, %v166_v6 }
  0xd3   :  { %v533_v15 = vsel %vm532_vm8, %v531_v8, %v526_v10  ;;  %v693_v8 = vrot.slane %v455_v60, %v1222_v21 }
  0xd4   :  { %v566_v11 = vrot.slane %v429_v5, %v1304_v56  ;;  %v571_v9 = vrot.slane %v430_v7, %v1307_v55  ;;  %v211_v12 = vpop.xlane.xlu1 %210  ;;  %v350_v38 = vpack.c.bf16 %v301_v26, %v300_v27 }
  0xd5   :  { %v208_v14 = vpop.xlane.xlu0 %207  ;;  %v315_v47 = vmul.f32 0.015625, %v211_v12  ;;  %v697_v12 = vrot.slane %v456_v63, %v1225_v22 }
  0xd6   :  { %v567_v2 = vsel %vm525_vm7, %v566_v11, %v1276_v1  ;;  %v443_v46 = vunpack.c.l.b16 %v350_v38  ;;  %v314_v48 = vmul.f32 0.015625, %v208_v14  ;;  %v444_v52 = vunpack.c.h.b16 %v350_v38 }
  0xd7   :  { %v572_v16 = vsel %vm532_vm8, %v571_v9, %v567_v2 }
  0xd8   :  { %v808_v17 = vsel %vm807_vm9, %v572_v16, %v533_v15  ;;  %v229_v18 = vpop.xlane.xlu1 %228  ;;  %v634_v28 = vrot.slane %v443_v46, %v1259_v29  ;;  %v357_v54 = vpack.c.bf16 %v315_v47, %v314_v48  ;;  %v639_v0 = vrot.slane %v444_v52, %v1262_v32 }
  0xd9   :  { %v226_v19 = vpop.xlane.xlu0 %225  ;;  %v321_v45 = vmul.f32 0.015625, %v229_v18 }
  0xda   :  { %v635_v3 = vsel %vm511_vm5, %v634_v28, %v1283_v13  ;;  %v457_v4 = vunpack.c.l.b16 %v357_v54  ;;  %v320_v2 = vmul.f32 0.015625, %v226_v19  ;;  %v458_v15 = vunpack.c.h.b16 %v357_v54 }
  0xdb   :  { %v640_v14 = vsel %vm518_vm6, %v639_v0, %v635_v3  ;;  %v698_v19 = vsel %vm490_vm2, %v697_v12, %v693_v8 }
  0xdc   :  { %v151_v20 = vpop.xlane.xlu1 %150  ;;  %v702_v16 = vrot.slane %v457_v4, %v1228_v30 }
  0xdd   :  { %v148_v23 = vpop.xlane.xlu0 %147  ;;  %v295_v50 = vmul.f32 0.015625, %v151_v20 }
  0xde   :  { %v294_v24 = vmul.f32 0.015625, %v148_v23 }
  0xe0   :  { %v347_v25 = vpack.c.bf16 %v295_v50, %v294_v24  ;;  %v193_v33 = vpop.xlane.xlu1 %192 }
  0xe1   :  { %v190_v34 = vpop.xlane.xlu0 %189  ;;  %v309_v61 = vmul.f32 0.015625, %v193_v33 }
  0xe2   :  { %v437_v35 = vunpack.c.l.b16 %v347_v25  ;;  %v438_v36 = vunpack.c.h.b16 %v347_v25  ;;  %v308_v62 = vmul.f32 0.015625, %v190_v34  ;;  %v360_v34 = vpack.c.bf16 %v321_v45, %v320_v2 }
  0xe4   :  { %v605_v1 = vrot.slane %v437_v35, %v1304_v56  ;;  %v610_v37 = vrot.slane %v438_v36, %v1307_v55  ;;  %v235_v39 = vpop.xlane.xlu1 %234  ;;  %v354_v10 = vpack.c.bf16 %v309_v61, %v308_v62  ;;  %v707_v35 = vrot.slane %v458_v15, %v1231_v31 }
  0xe5   :  { %v232_v40 = vpop.xlane.xlu0 %231  ;;  %v323_v50 = vmul.f32 0.015625, %v235_v39  ;;  %v703_v39 = vsel %vm497_vm3, %v702_v16, %v698_v19  ;;  %v463_v28 = vunpack.c.l.b16 %v360_v34  ;;  %v464_v54 = vunpack.c.h.b16 %v360_v34 }
  0xe6   :  { %v606_v41 = vsel %vm525_vm7, %v605_v1, %v601_v42  ;;  %v322_v24 = vmul.f32 0.015625, %v232_v40  ;;  %v451_v27 = vunpack.c.l.b16 %v354_v10  ;;  %v452_v36 = vunpack.c.h.b16 %v354_v10 }
  0xe7   :  { %v611_v43 = vsel %vm532_vm8, %v610_v37, %v606_v41 }
  0xe8   :  { %v810_v44 = vsel %vm809_vm10, %v611_v43, %v808_v17  ;;  %v253_v49 = vpop.xlane.xlu1 %252  ;;  %v361_v40 = vpack.c.bf16 %v323_v50, %v322_v24  ;;  %v673_v46 = vrot.slane %v451_v27, %v1259_v29 }
  0xe9   :  { %v250_v51 = vpop.xlane.xlu0 %249  ;;  %v329_v47 = vmul.f32 0.015625, %v253_v49 }
  0xea   :  { %v328_v48 = vmul.f32 0.015625, %v250_v51  ;;  %v674_v49 = vsel %vm511_vm5, %v673_v46, %v1300_v53  ;;  %v466_v8 = vunpack.c.h.b16 %v361_v40 }
  0xec   :  { %v175_v57 = vpop.xlane.xlu1 %174  ;;  %v364_v51 = vpack.c.bf16 %v329_v47, %v328_v48 }
  0xed   :  { %v172_v58 = vpop.xlane.xlu0 %171  ;;  %v303_v59 = vmul.f32 0.015625, %v175_v57 }
  0xee   :  { %v302_v42 = vmul.f32 0.015625, %v172_v58 }
  0xf0   :  { %v351_v6 = vpack.c.bf16 %v303_v59, %v302_v42  ;;  %v217_v5 = vpop.xlane.xlu1 %216  ;;  %v708_v59 = vsel %vm504_vm4, %v707_v35, %v703_v39  ;;  %v465_v42 = vunpack.c.l.b16 %v361_v40 }
  0xf1   :  { %v214_v7 = vpop.xlane.xlu0 %213  ;;  %v317_v25 = vmul.f32 0.015625, %v217_v5  ;;  %v732_v5 = vrot.slane %v463_v28, %v1222_v21 }
  0xf2   :  { %v445_v11 = vunpack.c.l.b16 %v351_v6  ;;  %v446_v9 = vunpack.c.h.b16 %v351_v6  ;;  %v316_v26 = vmul.f32 0.015625, %v214_v7  ;;  %v736_v7 = vrot.slane %v464_v54, %v1225_v22 }
  0xf4   :  { %v644_v13 = vrot.slane %v445_v11, %v1304_v56  ;;  %v649_v17 = vrot.slane %v446_v9, %v1307_v55  ;;  %v259_v20 = vpop.xlane.xlu1 %258  ;;  %v358_v41 = vpack.c.bf16 %v317_v25, %v316_v26  ;;  %v737_v24 = vsel %vm490_vm2, %v736_v7, %v732_v5 }
  0xf5   :  { %v256_v23 = vpop.xlane.xlu0 %255  ;;  %v331_v57 = vmul.f32 0.015625, %v259_v20  ;;  %v471_v20 = vunpack.c.l.b16 %v364_v51 }
  0xf6   :  { %v645_v33 = vsel %vm525_vm7, %v644_v13, %v640_v14  ;;  %v330_v58 = vmul.f32 0.015625, %v256_v23  ;;  %v459_v63 = vunpack.c.l.b16 %v358_v41  ;;  %v460_v11 = vunpack.c.h.b16 %v358_v41 }
  0xf7   :  { %v650_v18 = vsel %vm532_vm8, %v649_v17, %v645_v33  ;;  %v741_v17 = vrot.slane %v465_v42, %v1228_v30  ;;  %v472_v23 = vunpack.c.h.b16 %v364_v51  ;;  %v746_v33 = vrot.slane %v466_v8, %v1231_v31 }
  0xf8   :  { %v812_v1 = vsel %vm811_vm11, %v650_v18, %v810_v44  ;;  %v199_v37 = vpop.xlane.xlu1 %198  ;;  %v678_v44 = vrot.slane %v452_v36, %v1262_v32  ;;  %v365_v10 = vpack.c.bf16 %v331_v57, %v330_v58  ;;  %v712_v15 = vrot.slane %v459_v63, %v1259_v29 }
  0xf9   :  { %v196_v38 = vpop.xlane.xlu0 %195  ;;  %v311_v43 = vmul.f32 0.015625, %v199_v37  ;;  %v717_v34 = vrot.slane %v460_v11, %v1262_v32  ;;  %v742_v41 = vsel %vm497_vm3, %v741_v17, %v737_v24  ;;  %v775_v46 = vrot.slane %v472_v23, %v1225_v22 }
  0xfa   :  { %v310_v52 = vmul.f32 0.015625, %v196_v38  ;;  %v679_v53 = vsel %vm518_vm6, %v678_v44, %v674_v49  ;;  %v473_v25 = vunpack.c.l.b16 %v365_v10  ;;  %v713_v37 = vsel %vm511_vm5, %v712_v15, %v708_v59 }
  0xfb   :  { %v474_v48 = vunpack.c.h.b16 %v365_v10  ;;  %v718_v54 = vsel %vm518_vm6, %v717_v34, %v713_v37 }
  0xfc   :  { %v355_v60 = vpack.c.bf16 %v311_v43, %v310_v52  ;;  %v241_v61 = vpop.xlane.xlu1 %240  ;;  %v771_v43 = vrot.slane %v471_v20, %v1222_v21  ;;  %v780_v52 = vrot.slane %v473_v25, %v1228_v30 }
  0xfd   :  { %v238_v62 = vpop.xlane.xlu0 %237  ;;  %v325_v0 = vmul.f32 0.015625, %v241_v61 }
  0xfe   :  { %v324_v3 = vmul.f32 0.015625, %v238_v62  ;;  %v453_v4 = vunpack.c.l.b16 %v355_v60  ;;  %v454_v6 = vunpack.c.h.b16 %v355_v60  ;;  %v747_v62 = vsel %vm504_vm4, %v746_v33, %v742_v41 }
  0xff   :  { %v776_v30 = vsel %vm490_vm2, %v775_v46, %v771_v43 }
 0x100   :  { %v683_v9 = vrot.slane %v453_v4, %v1304_v56  ;;  %v688_v12 = vrot.slane %v454_v6, %v1307_v55  ;;  %v362_v14 = vpack.c.bf16 %v325_v0, %v324_v3  ;;  %v223_v45 = vpop.xlane.xlu1 %222  ;;  %v781_v0 = vsel %vm497_vm3, %v780_v52, %v776_v30 }
 0x101   :  { %v220_v2 = vpop.xlane.xlu0 %219  ;;  %v319_v16 = vmul.f32 0.015625, %v223_v45  ;;  %v785_v3 = vrot.slane %v474_v48, %v1231_v31 }
 0x102   :  { %v318_v13 = vmul.f32 0.015625, %v220_v2  ;;  %v684_v50 = vsel %vm525_vm7, %v683_v9, %v679_v53  ;;  %v467_v19 = vunpack.c.l.b16 %v362_v14  ;;  %v468_v57 = vunpack.c.h.b16 %v362_v14 }
 0x103   :  { %v689_v26 = vsel %vm532_vm8, %v688_v12, %v684_v50  ;;  %v786_v53 = vsel %vm504_vm4, %v785_v3, %v781_v0 }
 0x104   :  { %v359_v27 = vpack.c.bf16 %v319_v16, %v318_v13  ;;  %v814_v18 = vsel %vm813_vm12, %v689_v26, %v812_v1  ;;  %v265_v35 = vpop.xlane.xlu1 %264  ;;  %v751_v58 = vrot.slane %v467_v19, %v1259_v29  ;;  %v756_v6 = vrot.slane %v468_v57, %v1262_v32 }
 0x105   :  { %v262_v36 = vpop.xlane.xlu0 %261  ;;  %v333_v40 = vmul.f32 0.015625, %v265_v35 }
 0x106   :  { %v461_v38 = vunpack.c.l.b16 %v359_v27  ;;  %v462_v39 = vunpack.c.h.b16 %v359_v27  ;;  %v332_v47 = vmul.f32 0.015625, %v262_v36  ;;  %v752_v4 = vsel %vm511_vm5, %v751_v58, %v747_v62 }
 0x107   :  { %v757_v15 = vsel %vm518_vm6, %v756_v6, %v752_v4 }
 0x108   :  { %v722_v1 = vrot.slane %v461_v38, %v1304_v56  ;;  %v727_v28 = vrot.slane %v462_v39, %v1307_v55  ;;  %v366_v59 = vpack.c.bf16 %v333_v40, %v332_v47  ;;  %v247_v44 = vpop.xlane.xlu1 %246 }
 0x109   :  { %v244_v60 = vpop.xlane.xlu0 %243  ;;  %v327_v61 = vmul.f32 0.015625, %v247_v44 }
 0x10a   :  { %v723_v21 = vsel %vm525_vm7, %v722_v1, %v718_v54  ;;  %v326_v22 = vmul.f32 0.015625, %v244_v60  ;;  %v475_v63 = vunpack.c.l.b16 %v366_v59  ;;  %v476_v5 = vunpack.c.h.b16 %v366_v59 }
 0x10b   :  { %v728_v42 = vsel %vm532_vm8, %v727_v28, %v723_v21 }
 0x10c   :  { %v363_v49 = vpack.c.bf16 %v327_v61, %v326_v22  ;;  %v816_v51 = vsel %vm815_vm13, %v728_v42, %v814_v18  ;;  %v790_v7 = vrot.slane %v475_v63, %v1259_v29  ;;  %v271_v8 = vpop.xlane.xlu1 %270  ;;  %v795_v16 = vrot.slane %v476_v5, %v1262_v32  ;;  %v894_v18 = vld [vmem:[%s1400_s2] ss:$0 sm:$0xff] }
 0x10d   :  { %v268_v10 = vpop.xlane.xlu0 %267  ;;  %v335_v12 = vmul.f32 0.015625, %v271_v8 }
 0x10e   :  { %v469_v11 = vunpack.c.l.b16 %v363_v49  ;;  %v470_v9 = vunpack.c.h.b16 %v363_v49  ;;  %v334_v14 = vmul.f32 0.015625, %v268_v10  ;;  %v791_v13 = vsel %vm511_vm5, %v790_v7, %v786_v53 }
 0x10f   :  { %v796_v25 = vsel %vm518_vm6, %v795_v16, %v791_v13 }
 0x110   :  { %v761_v45 = vrot.slane %v469_v11, %v1304_v56  ;;  %v766_v31 = vrot.slane %v470_v9, %v1307_v55  ;;  %v367_v2 = vpack.c.bf16 %v335_v12, %v334_v14 }
 0x112   :  { %v762_v29 = vsel %vm525_vm7, %v761_v45, %v757_v15  ;;  %v477_v17 = vunpack.c.l.b16 %v367_v2  ;;  %v478_v20 = vunpack.c.h.b16 %v367_v2 }
 0x113   :  { %v767_v23 = vsel %vm532_vm8, %v766_v31, %v762_v29 }
 0x114   :  { %v800_v50 = vrot.slane %v477_v17, %v1304_v56  ;;  %v805_v24 = vrot.slane %v478_v20, %v1307_v55  ;;  %v818_v27 = vsel %vm817_vm14, %v767_v23, %v816_v51 }
 0x116   :  { %v801_v26 = vsel %vm525_vm7, %v800_v50, %v796_v25 }
 0x117   :  { %v806_v32 = vsel %vm532_vm8, %v805_v24, %v801_v26 }
 0x118   :  { %v820_v33 = vsel %vm819_vm15, %v806_v32, %v818_v27 }
 0x119   :  { %v821_v34 = vpack.c.b16 %v820_v33, %v820_v33 }
 0x11b   :  { %914 = vmatmul.mubr.msk.bf16.vlgmr.msra.gmra.mrb[0].mxu0 %vm79_vm0, %v821_v34 }
 0x1ee   :  { %v883_v56 = vpop.f32.mrb[0].mxu0 }
 0x1ef   :  { %v884_v19 = vadd.f32 %v894_v18, %v883_v56  ;;  %v915_v55 = vpop.f32.mrb[1].mxu0 }
 0x1f0   :  { %v886_v35 = vpop.f32.mrb[2].mxu0 }
 0x1f1   :  { %889 = vst [vmem:[%s1401_s3] sm:$0xff] %v884_v19  ;;  %v916_v36 = vpop.f32.mrb[3].mxu0 }

</bundles_post_ra>
